<compile_context>
chip_gen: v7x
topology: tpu7x:2x2x1
jax: 0.10.0
libtpu: 0.0.40
codegen_flags: <defaults>
</compile_context>

<pallas_src>
import jax
import jax.numpy as jnp
from jax.experimental import pallas as pl
from jax.experimental.pallas import tpu as pltpu


def _layernorm(x, gamma, beta, eps=1e-5):
    mu = jnp.mean(x, axis=-1, keepdims=True)
    xc = x - mu
    var = jnp.mean(xc * xc, axis=-1, keepdims=True)
    return xc * jax.lax.rsqrt(var + eps) * gamma + beta


def compressor_kernel(ids_rep_ref, vpat_ref,
                      ew_ref, eb1_ref, eg_ref, ebeta_ref,
                      mw_ref, mb_ref, dg_ref, dbeta_ref,
                      ow_ref, ob_ref, out_ref):
    # --- embedding gather as a lane-dense one-hot, built directly in bf16 ----
    # ids_rep[b, t*V + v] == ids[b, t]; vpat[0, t*V + v] == v, so
    # onehot[b, t*V + v] = 1{ids[b, t] == v}.
    # TODO(synk): out-of-range token ids produce an all-zero one-hot row (zero
    # embedding) instead of raising like torch.nn.Embedding.
    onehot = jnp.where(ids_rep_ref[...] == vpat_ref[...],
                       jnp.bfloat16(1), jnp.bfloat16(0))              # (blk, T*V) bf16

    # --- encoder: (one-hot @ folded[emb ; enc_w1]) + folded[PE ; bias] -------
    pre1 = jnp.dot(onehot, ew_ref[...],
                   preferred_element_type=jnp.float32) + eb1_ref[...]  # (blk, 2D)
    h1 = jnp.maximum(_layernorm(pre1, eg_ref[...], ebeta_ref[...]), 0.0)

    # --- folded latent pair: h1 @ (enc_w2 @ dec_w1) + folded bias ------------
    d_pre = jnp.dot(h1, mw_ref[...],
                    preferred_element_type=jnp.float32) + mb_ref[...]  # (blk, 2D)
    d1 = jnp.maximum(_layernorm(d_pre, dg_ref[...], dbeta_ref[...]), 0.0)

    # --- folded [dec_w2 ; per-token out] projection, lane-dense output -------
    logits = jnp.dot(d1.astype(jnp.bfloat16), ow_ref[...],
                     preferred_element_type=jnp.float32) + ob_ref[...]  # (blk, T*V)
    out_ref[...] = logits.astype(out_ref.dtype)


def fold_params(p, T, D, V):
    """Exact host-side refactoring of the module parameters for the kernel."""
    hp = jax.lax.Precision.HIGHEST
    H = p["enc_w1"].shape[1]                                   # 2*D

    # Encoder: fold embedding into enc_w1, PE into the bias.
    ew1 = p["enc_w1"].reshape(T, D, H)
    enc_w_fused = jnp.einsum("vd,tdh->tvh", p["emb"], ew1,
                             precision=hp).reshape(T * V, H)
    enc_b1_fused = p["enc_b1"] + jnp.dot(p["pe"].reshape(1, T * D),
                                         p["enc_w1"], precision=hp)

    # Latent pair: enc_w2 @ dec_w1 (no nonlinearity in between -> exact fold).
    mid_w = jnp.dot(p["enc_w2"], p["dec_w1"], precision=hp)            # (H, H)
    mid_b = jnp.dot(p["enc_b2"], p["dec_w1"], precision=hp) + p["dec_b1"]

    # Decoder tail: fold dec_w2 with the per-token output projection.
    dw2 = p["dec_w2"].reshape(H, T, D)
    out_w_fused = jnp.einsum("htd,dv->htv", dw2, p["out_w"],
                             precision=hp).reshape(H, T * V)
    out_b_fused = (jnp.einsum("td,dv->tv", p["dec_b2"].reshape(T, D),
                              p["out_w"], precision=hp)
                   + p["out_b"]).reshape(1, T * V)

    # int16 side-channel (token ids fit comfortably); int32 fallback otherwise.
    idx_dtype = jnp.int16 if V <= 32767 else jnp.int32
    vpat = jnp.tile(jnp.arange(V, dtype=jnp.int32), T).reshape(1, T * V)
    vpat = vpat.astype(idx_dtype)

    # TODO(synk): on v7x, quantize enc_w_fused / out_w_fused to fp8 (MXU-native
    # there) once the error budget is re-validated against the consumer.
    return dict(
        vpat=vpat,
        enc_w_fused=enc_w_fused.astype(jnp.bfloat16),
        enc_b1=enc_b1_fused.astype(jnp.float32),
        enc_g=p["enc_g"], enc_beta=p["enc_beta"],
        mid_w=mid_w.astype(jnp.float32), mid_b=mid_b.astype(jnp.float32),
        dec_g=p["dec_g"], dec_beta=p["dec_beta"],
        out_w_fused=out_w_fused.astype(jnp.bfloat16),
        out_b=out_b_fused.astype(jnp.float32),
    )


def compressor_forward(ids, fp, T, V, *, block_b=128, out_dtype=jnp.float32):
    B = ids.shape[0]
    TV = T * V

    # Batch tiling: full-batch single step when small, 128-row blocks (sublane
    # aligned) when large; pad the batch up to a block multiple if needed.
    if B <= block_b:
        blk, Bp = B, B
    else:
        blk = block_b
        Bp = int(pl.cdiv(B, blk)) * blk
    if Bp != B:
        ids = jnp.pad(ids, ((0, Bp - B), (0, 0)))

    # Layout plumbing (wrapper side): repeat each id V times so the kernel's
    # one-hot lives directly in the lane-dense (B, T*V) layout; narrow dtype
    # keeps the HBM round-trip small.
    ids_rep = jnp.repeat(ids.astype(fp["vpat"].dtype), V, axis=1)       # (Bp, T*V)

    args = (ids_rep, fp["vpat"],
            fp["enc_w_fused"], fp["enc_b1"], fp["enc_g"], fp["enc_beta"],
            fp["mid_w"], fp["mid_b"], fp["dec_g"], fp["dec_beta"],
            fp["out_w_fused"], fp["out_b"])

    H = fp["enc_w_fused"].shape[1]
    flops = 2 * Bp * (TV * H + H * H + H * TV)
    bytes_accessed = (sum(int(a.size) * int(a.dtype.itemsize) for a in args)
                      + Bp * TV * jnp.dtype(out_dtype).itemsize)

    # Batch-tiled specs; every weight has a constant index_map so it is fetched
    # once and stays resident across grid steps.
    in_specs = [pl.BlockSpec((blk, TV), lambda i: (i, 0)),              # ids_rep
                pl.BlockSpec((1, TV), lambda i: (0, 0))]                # vpat
    in_specs += [pl.BlockSpec(a.shape, lambda i: (0,) * a.ndim) for a in args[2:]]
    out_spec = pl.BlockSpec((blk, TV), lambda i: (i, 0))

    # TODO(synk): tile the T*V axis (reduction "arbitrary" axis for the encoder
    # matmul with an f32 acc + pl.when init, parallel output tiles for the
    # decoder matmul) before vocab grows: at V~16K the folded bf16 weights
    # alone exceed v7x's 64 MiB VMEM (they still fit v5e/v6e's 128 MiB).
    # TODO(synk): for large vocabularies replace the one-hot matmul with a
    # PrefetchScalarGridSpec-driven pl.Element row-gather of the embedding.
    out = pl.pallas_call(
        compressor_kernel,
        out_shape=jax.ShapeDtypeStruct((Bp, TV), out_dtype),
        grid=(Bp // blk,),
        in_specs=in_specs,
        out_specs=out_spec,
        compiler_params=pltpu.CompilerParams(
            dimension_semantics=("parallel",)),
        cost_estimate=pl.CostEstimate(flops=flops, transcendentals=2 * Bp,
                                      bytes_accessed=bytes_accessed),
    )(*args)
    return out[:B].reshape(B, T, V)


def init_params(key, vocab_size, n_dims, max_len, n_latent):
    ks = jax.random.split(key, 8)

    def linear(k, fan_in, fan_out):
        kw, kb = jax.random.split(k)
        bound = 1.0 / jnp.sqrt(float(fan_in))
        w = jax.random.uniform(kw, (fan_in, fan_out), jnp.float32, -bound, bound)
        b = jax.random.uniform(kb, (1, fan_out), jnp.float32, -bound, bound)
        return w, b

    # embedding matrix: synthetic deterministic init; rows 0/1 stand in for <pad>/<unk>
    emb = 0.1 * jax.random.normal(ks[0], (vocab_size, n_dims), jnp.float32)
    emb = emb.at[0].set(0.0).at[1].set(0.0)

    # sinusoidal positional encoding (same formula as the module)
    pos = jnp.arange(max_len, dtype=jnp.float32)[:, None]
    div = jnp.exp(jnp.arange(0, n_dims, 2, dtype=jnp.float32)
                  * (-jnp.log(10000.0) / n_dims))
    pe = jnp.zeros((max_len, n_dims), jnp.float32)
    pe = pe.at[:, 0::2].set(jnp.sin(pos * div))
    pe = pe.at[:, 1::2].set(jnp.cos(pos * div))

    enc_w1, enc_b1 = linear(ks[1], n_dims * max_len, n_dims * 2)
    enc_w2, enc_b2 = linear(ks[2], n_dims * 2, n_latent)
    dec_w1, dec_b1 = linear(ks[3], n_latent, n_dims * 2)
    dec_w2, dec_b2 = linear(ks[4], n_dims * 2, n_dims * max_len)
    out_w, out_b = linear(ks[5], n_dims, vocab_size)

    ones = jnp.ones((1, n_dims * 2), jnp.float32)
    zeros = jnp.zeros((1, n_dims * 2), jnp.float32)
    return dict(emb=emb, pe=pe,
                enc_w1=enc_w1, enc_b1=enc_b1, enc_g=ones, enc_beta=zeros,
                enc_w2=enc_w2, enc_b2=enc_b2,
                dec_w1=dec_w1, dec_b1=dec_b1, dec_g=ones, dec_beta=zeros,
                dec_w2=dec_w2, dec_b2=dec_b2,
                out_w=out_w, out_b=out_b)


def reference_forward(ids, p):
    """Unfused forward matching the PyTorch module, at HIGHEST precision."""
    B, T = ids.shape
    V, D = p["emb"].shape
    hp = jax.lax.Precision.HIGHEST

    def ln(x, g, b):
        mu = x.mean(-1, keepdims=True)
        v = ((x - mu) ** 2).mean(-1, keepdims=True)
        return (x - mu) / jnp.sqrt(v + 1e-5) * g + b

    h = p["emb"][ids] + p["pe"][None]
    h = h.reshape(B, -1)
    h1 = jnp.maximum(ln(jnp.dot(h, p["enc_w1"], precision=hp) + p["enc_b1"],
                        p["enc_g"], p["enc_beta"]), 0.0)
    z = jnp.dot(h1, p["enc_w2"], precision=hp) + p["enc_b2"]
    d1 = jnp.maximum(ln(jnp.dot(z, p["dec_w1"], precision=hp) + p["dec_b1"],
                        p["dec_g"], p["dec_beta"]), 0.0)
    d2 = jnp.dot(d1, p["dec_w2"], precision=hp) + p["dec_b2"]
    tok = d2.reshape(B * T, D)
    return (jnp.dot(tok, p["out_w"], precision=hp) + p["out_b"]).reshape(B, T, V)


if __name__ == "__main__":
    B = 2
    max_len = 32        # T
    n_dims = 16         # word_vectors.vector_size
    n_latent = 16
    vocab_size = 64

    key = jax.random.PRNGKey(0)
    k_param, k_ids = jax.random.split(key)
    params = init_params(k_param, vocab_size, n_dims, max_len, n_latent)
    folded = fold_params(params, max_len, n_dims, vocab_size)
    ids = jax.random.randint(k_ids, (B, max_len), 0, vocab_size, dtype=jnp.int32)

    out = compressor_forward(ids, folded, max_len, vocab_size)
    out = jax.block_until_ready(out)

    ref = reference_forward(ids, params)
    assert out.shape == (B, max_len, vocab_size)
    # bf16 MXU operands for the two large folded matmuls bound the error ~1e-2.
    assert jnp.allclose(out, ref, rtol=2e-2, atol=2e-2)
    print("KERNEL_OK")
</pallas_src>

<mosaic_0001>
module attributes {stable_mosaic.version = 11 : i64} {
  func.func @compressor_kernel(%arg0: i32, %arg1: memref<2x2048xi16, #tpu.memory_space<vmem>>, %arg2: memref<1x2048xi16, #tpu.memory_space<vmem>>, %arg3: memref<2048x32xbf16, #tpu.memory_space<vmem>>, %arg4: memref<1x32xf32, #tpu.memory_space<vmem>>, %arg5: memref<1x32xf32, #tpu.memory_space<vmem>>, %arg6: memref<1x32xf32, #tpu.memory_space<vmem>>, %arg7: memref<32x32xf32, #tpu.memory_space<vmem>>, %arg8: memref<1x32xf32, #tpu.memory_space<vmem>>, %arg9: memref<1x32xf32, #tpu.memory_space<vmem>>, %arg10: memref<1x32xf32, #tpu.memory_space<vmem>>, %arg11: memref<32x2048xbf16, #tpu.memory_space<vmem>>, %arg12: memref<1x2048xf32, #tpu.memory_space<vmem>>, %arg13: memref<2x2048xf32, #tpu.memory_space<vmem>>) attributes {dimension_semantics = [#tpu.dimension_semantics<parallel>], iteration_bounds = array<i64: 1>, scalar_prefetch = 0 : i64, scratch_operands = 0 : i64, tpu.core_type = #tpu.core_type<tc>, window_params = [{transform_indices = @transform_0, window_bounds = array<i64: 2, 2048>}, {pipeline_mode = #tpu.pipeline_mode<synchronous>, transform_indices = @transform_1, window_bounds = array<i64: 1, 2048>}, {pipeline_mode = #tpu.pipeline_mode<synchronous>, transform_indices = @transform_2, window_bounds = array<i64: 2048, 32>}, {pipeline_mode = #tpu.pipeline_mode<synchronous>, transform_indices = @transform_3, window_bounds = array<i64: 1, 32>}, {pipeline_mode = #tpu.pipeline_mode<synchronous>, transform_indices = @transform_4, window_bounds = array<i64: 1, 32>}, {pipeline_mode = #tpu.pipeline_mode<synchronous>, transform_indices = @transform_5, window_bounds = array<i64: 1, 32>}, {pipeline_mode = #tpu.pipeline_mode<synchronous>, transform_indices = @transform_6, window_bounds = array<i64: 32, 32>}, {pipeline_mode = #tpu.pipeline_mode<synchronous>, transform_indices = @transform_7, window_bounds = array<i64: 1, 32>}, {pipeline_mode = #tpu.pipeline_mode<synchronous>, transform_indices = @transform_8, window_bounds = array<i64: 1, 32>}, {pipeline_mode = #tpu.pipeline_mode<synchronous>, transform_indices = @transform_9, window_bounds = array<i64: 1, 32>}, {pipeline_mode = #tpu.pipeline_mode<synchronous>, transform_indices = @transform_10, window_bounds = array<i64: 32, 2048>}, {pipeline_mode = #tpu.pipeline_mode<synchronous>, transform_indices = @transform_11, window_bounds = array<i64: 1, 2048>}, {transform_indices = @transform_12, window_bounds = array<i64: 2, 2048>}]} {
    %c0 = arith.constant 0 : index
    %c0_0 = arith.constant 0 : index
    %0 = vector.load %arg1[%c0, %c0_0] : memref<2x2048xi16, #tpu.memory_space<vmem>>, vector<2x2048xi16>
    %c0_1 = arith.constant 0 : index
    %c0_2 = arith.constant 0 : index
    %1 = vector.load %arg2[%c0_1, %c0_2] : memref<1x2048xi16, #tpu.memory_space<vmem>>, vector<1x2048xi16>
    %2 = vector.broadcast %1 : vector<1x2048xi16> to vector<2x2048xi16>
    %3 = arith.cmpi eq, %0, %2 : vector<2x2048xi16>
    %cst = arith.constant 1.000000e+00 : bf16
    %cst_3 = arith.constant 0.000000e+00 : bf16
    %4 = vector.broadcast %cst : bf16 to vector<2x2048xbf16>
    %5 = vector.broadcast %cst_3 : bf16 to vector<2x2048xbf16>
    %6 = arith.select %3, %4, %5 : vector<2x2048xi1>, vector<2x2048xbf16>
    %c0_4 = arith.constant 0 : index
    %c0_5 = arith.constant 0 : index
    %7 = vector.load %arg3[%c0_4, %c0_5] : memref<2048x32xbf16, #tpu.memory_space<vmem>>, vector<2048x32xbf16>
    %cst_6 = arith.constant dense<0.000000e+00> : vector<2x32xf32>
    %8 = tpu.matmul %6, %7, %cst_6 {dimension_numbers = #tpu.dot_dimension_numbers<[1], [0], [0], [1], [0, 0, 1, 1], [], []>} : vector<2x2048xbf16>, vector<2048x32xbf16>, vector<2x32xf32> -> vector<2x32xf32>
    %c0_7 = arith.constant 0 : index
    %c0_8 = arith.constant 0 : index
    %9 = vector.load %arg4[%c0_7, %c0_8] : memref<1x32xf32, #tpu.memory_space<vmem>>, vector<1x32xf32>
    %10 = vector.broadcast %9 : vector<1x32xf32> to vector<2x32xf32>
    %11 = arith.addf %8, %10 : vector<2x32xf32>
    %c0_9 = arith.constant 0 : index
    %c0_10 = arith.constant 0 : index
    %12 = vector.load %arg5[%c0_9, %c0_10] : memref<1x32xf32, #tpu.memory_space<vmem>>, vector<1x32xf32>
    %c0_11 = arith.constant 0 : index
    %c0_12 = arith.constant 0 : index
    %13 = vector.load %arg6[%c0_11, %c0_12] : memref<1x32xf32, #tpu.memory_space<vmem>>, vector<1x32xf32>
    %cst_13 = arith.constant dense<0.000000e+00> : vector<2xf32>
    %14 = vector.multi_reduction <add>, %11, %cst_13 [1] : vector<2x32xf32> to vector<2xf32>
    %15 = vector.shape_cast %14 : vector<2xf32> to vector<2x1xf32>
    %cst_14 = arith.constant 3.200000e+01 : f32
    %16 = vector.broadcast %cst_14 : f32 to vector<2x1xf32>
    %17 = arith.divf %15, %16 : vector<2x1xf32>
    %18 = vector.broadcast %17 : vector<2x1xf32> to vector<2x32xf32>
    %19 = arith.subf %11, %18 : vector<2x32xf32>
    %20 = arith.mulf %19, %19 : vector<2x32xf32>
    %cst_15 = arith.constant dense<0.000000e+00> : vector<2xf32>
    %21 = vector.multi_reduction <add>, %20, %cst_15 [1] : vector<2x32xf32> to vector<2xf32>
    %22 = vector.shape_cast %21 : vector<2xf32> to vector<2x1xf32>
    %cst_16 = arith.constant 3.200000e+01 : f32
    %23 = vector.broadcast %cst_16 : f32 to vector<2x1xf32>
    %24 = arith.divf %22, %23 : vector<2x1xf32>
    %cst_17 = arith.constant 9.99999974E-6 : f32
    %25 = vector.broadcast %cst_17 : f32 to vector<2x1xf32>
    %26 = arith.addf %24, %25 : vector<2x1xf32>
    %27 = math.rsqrt %26 : vector<2x1xf32>
    %28 = vector.broadcast %27 : vector<2x1xf32> to vector<2x32xf32>
    %29 = arith.mulf %19, %28 : vector<2x32xf32>
    %30 = vector.broadcast %12 : vector<1x32xf32> to vector<2x32xf32>
    %31 = arith.mulf %29, %30 : vector<2x32xf32>
    %32 = vector.broadcast %13 : vector<1x32xf32> to vector<2x32xf32>
    %33 = arith.addf %31, %32 : vector<2x32xf32>
    %cst_18 = arith.constant 0.000000e+00 : f32
    %34 = vector.broadcast %cst_18 : f32 to vector<2x32xf32>
    %35 = arith.maximumf %33, %34 : vector<2x32xf32>
    %c0_19 = arith.constant 0 : index
    %c0_20 = arith.constant 0 : index
    %36 = vector.load %arg7[%c0_19, %c0_20] : memref<32x32xf32, #tpu.memory_space<vmem>>, vector<32x32xf32>
    %cst_21 = arith.constant dense<0.000000e+00> : vector<2x32xf32>
    %37 = tpu.matmul %35, %36, %cst_21 {dimension_numbers = #tpu.dot_dimension_numbers<[1], [0], [0], [1], [0, 0, 1, 1], [], []>} : vector<2x32xf32>, vector<32x32xf32>, vector<2x32xf32> -> vector<2x32xf32>
    %c0_22 = arith.constant 0 : index
    %c0_23 = arith.constant 0 : index
    %38 = vector.load %arg8[%c0_22, %c0_23] : memref<1x32xf32, #tpu.memory_space<vmem>>, vector<1x32xf32>
    %39 = vector.broadcast %38 : vector<1x32xf32> to vector<2x32xf32>
    %40 = arith.addf %37, %39 : vector<2x32xf32>
    %c0_24 = arith.constant 0 : index
    %c0_25 = arith.constant 0 : index
    %41 = vector.load %arg9[%c0_24, %c0_25] : memref<1x32xf32, #tpu.memory_space<vmem>>, vector<1x32xf32>
    %c0_26 = arith.constant 0 : index
    %c0_27 = arith.constant 0 : index
    %42 = vector.load %arg10[%c0_26, %c0_27] : memref<1x32xf32, #tpu.memory_space<vmem>>, vector<1x32xf32>
    %cst_28 = arith.constant dense<0.000000e+00> : vector<2xf32>
    %43 = vector.multi_reduction <add>, %40, %cst_28 [1] : vector<2x32xf32> to vector<2xf32>
    %44 = vector.shape_cast %43 : vector<2xf32> to vector<2x1xf32>
    %cst_29 = arith.constant 3.200000e+01 : f32
    %45 = vector.broadcast %cst_29 : f32 to vector<2x1xf32>
    %46 = arith.divf %44, %45 : vector<2x1xf32>
    %47 = vector.broadcast %46 : vector<2x1xf32> to vector<2x32xf32>
    %48 = arith.subf %40, %47 : vector<2x32xf32>
    %49 = arith.mulf %48, %48 : vector<2x32xf32>
    %cst_30 = arith.constant dense<0.000000e+00> : vector<2xf32>
    %50 = vector.multi_reduction <add>, %49, %cst_30 [1] : vector<2x32xf32> to vector<2xf32>
    %51 = vector.shape_cast %50 : vector<2xf32> to vector<2x1xf32>
    %cst_31 = arith.constant 3.200000e+01 : f32
    %52 = vector.broadcast %cst_31 : f32 to vector<2x1xf32>
    %53 = arith.divf %51, %52 : vector<2x1xf32>
    %cst_32 = arith.constant 9.99999974E-6 : f32
    %54 = vector.broadcast %cst_32 : f32 to vector<2x1xf32>
    %55 = arith.addf %53, %54 : vector<2x1xf32>
    %56 = math.rsqrt %55 : vector<2x1xf32>
    %57 = vector.broadcast %56 : vector<2x1xf32> to vector<2x32xf32>
    %58 = arith.mulf %48, %57 : vector<2x32xf32>
    %59 = vector.broadcast %41 : vector<1x32xf32> to vector<2x32xf32>
    %60 = arith.mulf %58, %59 : vector<2x32xf32>
    %61 = vector.broadcast %42 : vector<1x32xf32> to vector<2x32xf32>
    %62 = arith.addf %60, %61 : vector<2x32xf32>
    %cst_33 = arith.constant 0.000000e+00 : f32
    %63 = vector.broadcast %cst_33 : f32 to vector<2x32xf32>
    %64 = arith.maximumf %62, %63 : vector<2x32xf32>
    %65 = arith.truncf %64 : vector<2x32xf32> to vector<2x32xbf16>
    %c0_34 = arith.constant 0 : index
    %c0_35 = arith.constant 0 : index
    %66 = vector.load %arg11[%c0_34, %c0_35] : memref<32x2048xbf16, #tpu.memory_space<vmem>>, vector<32x2048xbf16>
    %cst_36 = arith.constant dense<0.000000e+00> : vector<2x2048xf32>
    %67 = tpu.matmul %65, %66, %cst_36 {dimension_numbers = #tpu.dot_dimension_numbers<[1], [0], [0], [1], [0, 0, 1, 1], [], []>} : vector<2x32xbf16>, vector<32x2048xbf16>, vector<2x2048xf32> -> vector<2x2048xf32>
    %c0_37 = arith.constant 0 : index
    %c0_38 = arith.constant 0 : index
    %68 = vector.load %arg12[%c0_37, %c0_38] : memref<1x2048xf32, #tpu.memory_space<vmem>>, vector<1x2048xf32>
    %69 = vector.broadcast %68 : vector<1x2048xf32> to vector<2x2048xf32>
    %70 = arith.addf %67, %69 : vector<2x2048xf32>
    %c0_39 = arith.constant 0 : index
    %c0_40 = arith.constant 0 : index
    %71 = vector.load %arg13[%c0_39, %c0_40] : memref<2x2048xf32, #tpu.memory_space<vmem>>, vector<2x2048xf32>
    tpu.vector_store %arg13[%c0_39, %c0_40], %70 {strides = array<i32>} : memref<2x2048xf32, #tpu.memory_space<vmem>>, vector<2x2048xf32>,
    return
  }
  func.func @transform_0(%arg0: i32) -> (i32, i32) {
    %c0_i32 = arith.constant 0 : i32
    %c0_i32_0 = arith.constant 0 : i32
    return %arg0, %c0_i32 : i32, i32
  }
  func.func @transform_1(%arg0: i32) -> (i32, i32) {
    %c0_i32 = arith.constant 0 : i32
    %c0_i32_0 = arith.constant 0 : i32
    %c0_i32_1 = arith.constant 0 : i32
    return %c0_i32, %c0_i32_0 : i32, i32
  }
  func.func @transform_2(%arg0: i32) -> (i32, i32) {
    %c0_i32 = arith.constant 0 : i32
    %c0_i32_0 = arith.constant 0 : i32
    %c0_i32_1 = arith.constant 0 : i32
    return %c0_i32, %c0_i32_0 : i32, i32
  }
  func.func @transform_3(%arg0: i32) -> (i32, i32) {
    %c0_i32 = arith.constant 0 : i32
    %c0_i32_0 = arith.constant 0 : i32
    %c0_i32_1 = arith.constant 0 : i32
    return %c0_i32, %c0_i32_0 : i32, i32
  }
  func.func @transform_4(%arg0: i32) -> (i32, i32) {
    %c0_i32 = arith.constant 0 : i32
    %c0_i32_0 = arith.constant 0 : i32
    %c0_i32_1 = arith.constant 0 : i32
    return %c0_i32, %c0_i32_0 : i32, i32
  }
  func.func @transform_5(%arg0: i32) -> (i32, i32) {
    %c0_i32 = arith.constant 0 : i32
    %c0_i32_0 = arith.constant 0 : i32
    %c0_i32_1 = arith.constant 0 : i32
    return %c0_i32, %c0_i32_0 : i32, i32
  }
  func.func @transform_6(%arg0: i32) -> (i32, i32) {
    %c0_i32 = arith.constant 0 : i32
    %c0_i32_0 = arith.constant 0 : i32
    %c0_i32_1 = arith.constant 0 : i32
    return %c0_i32, %c0_i32_0 : i32, i32
  }
  func.func @transform_7(%arg0: i32) -> (i32, i32) {
    %c0_i32 = arith.constant 0 : i32
    %c0_i32_0 = arith.constant 0 : i32
    %c0_i32_1 = arith.constant 0 : i32
    return %c0_i32, %c0_i32_0 : i32, i32
  }
  func.func @transform_8(%arg0: i32) -> (i32, i32) {
    %c0_i32 = arith.constant 0 : i32
    %c0_i32_0 = arith.constant 0 : i32
    %c0_i32_1 = arith.constant 0 : i32
    return %c0_i32, %c0_i32_0 : i32, i32
  }
  func.func @transform_9(%arg0: i32) -> (i32, i32) {
    %c0_i32 = arith.constant 0 : i32
    %c0_i32_0 = arith.constant 0 : i32
    %c0_i32_1 = arith.constant 0 : i32
    return %c0_i32, %c0_i32_0 : i32, i32
  }
  func.func @transform_10(%arg0: i32) -> (i32, i32) {
    %c0_i32 = arith.constant 0 : i32
    %c0_i32_0 = arith.constant 0 : i32
    %c0_i32_1 = arith.constant 0 : i32
    return %c0_i32, %c0_i32_0 : i32, i32
  }
  func.func @transform_11(%arg0: i32) -> (i32, i32) {
    %c0_i32 = arith.constant 0 : i32
    %c0_i32_0 = arith.constant 0 : i32
    %c0_i32_1 = arith.constant 0 : i32
    return %c0_i32, %c0_i32_0 : i32, i32
  }
  func.func @transform_12(%arg0: i32) -> (i32, i32) {
    %c0_i32 = arith.constant 0 : i32
    %c0_i32_0 = arith.constant 0 : i32
    return %arg0, %c0_i32 : i32, i32
  }
}

</mosaic_0001>

<bundles_post_ra>
// kernel: tpu_custom_call.1
= control target key start
LH: loop header
LB: loop body
LE: loop exit
PB: predicated region body
PF: predicated region fallthrough
CT: control target
= control target key end

     0   :  { %v52_v30 = vlaneseq  ;;  %v3210_v34 = vmov 1966171168   ;;  %s3945_s0 = inlined_call_operand.vmem [shape: s16[2,2048], index: 0, kind: input, shape index: {}]   ;;  %s3946_s1 = inlined_call_operand.vmem [shape: s16[1,2048], index: 1, kind: input, shape index: {}]   ;;  %s3947_s2 = inlined_call_operand.vmem [shape: bf16[2048,32], index: 2, kind: input, shape index: {}]   ;;  %s3948_s3 = inlined_call_operand.vmem [shape: f32[1,32], index: 3, kind: input, shape index: {}]   ;;  %s3949_s4 = inlined_call_operand.vmem [shape: f32[1,32], index: 4, kind: input, shape index: {}]   ;;  %s3950_s5 = inlined_call_operand.vmem [shape: f32[1,32], index: 5, kind: input, shape index: {}]   ;;  %s3951_s6 = inlined_call_operand.vmem [shape: f32[32,32], index: 6, kind: input, shape index: {}]   ;;  %s3952_s7 = inlined_call_operand.vmem [shape: f32[1,32], index: 7, kind: input, shape index: {}]   ;;  %s3953_s8 = inlined_call_operand.vmem [shape: f32[1,32], index: 8, kind: input, shape index: {}]   ;;  %s3954_s9 = inlined_call_operand.vmem [shape: f32[1,32], index: 9, kind: input, shape index: {}]   ;;  %s3955_s10 = inlined_call_operand.vmem [shape: bf16[32,2048], index: 10, kind: input, shape index: {}]   ;;  %s3956_s11 = inlined_call_operand.vmem [shape: f32[1,2048], index: 11, kind: input, shape index: {}]   ;;  %s3957_s12 = inlined_call_operand.hbm [shape: f32[2,2048], index: 12, kind: output, shape index: {}]  }
   0x1   :  { %v3052_v0 = vld [vmem:[%s3947_s2 + $0x40] sm:$0xff]   ;;  %v3056_v4 = vld [vmem:[%s3947_s2 + $0x48] sm:$0xff]   ;;  %v3060_v8 = vld [vmem:[%s3947_s2 + $0x50] sm:$0xff]   ;;  %v50_v35 = vunpack.c.l.s4 %v3210_v34 }
   0x2   :  { %v3053_v1 = vld [vmem:[%s3947_s2] sm:$0xff]   ;;  %2847 = vmatprep.subr.bf16.mxu0 %v3052_v0  ;;  %v3057_v5 = vld [vmem:[%s3947_s2 + $0x8] sm:$0xff]   ;;  %v3061_v9 = vld [vmem:[%s3947_s2 + $0x10] sm:$0xff]   ;;  %v3381_v36 = vshrl.u32 %v52_v30, 7 }
   0x3   :  { %v3054_v2 = vld [vmem:[%s3947_s2 + $0xc0] sm:$0xff]   ;;  %2848 = vmatpush3.bf16.msra.mxu0 %v3053_v1  ;;  %v3058_v6 = vld [vmem:[%s3947_s2 + $0xc8] sm:$0xff]   ;;  %v3062_v10 = vld [vmem:[%s3947_s2 + $0xd0] sm:$0xff]   ;;  %v51_v39 = vunpack.c.0.s8 %v50_v35 }
   0x4   :  { %v3055_v3 = vld [vmem:[%s3947_s2 + $0x80] sm:$0xff]   ;;  %2869 = vmatprep.subr.bf16.mxu1 %v3054_v2  ;;  %2849 = vmatprep.subr.bf16.mxu0 %v3056_v4  ;;  %v3059_v7 = vld [vmem:[%s3947_s2 + $0x88] sm:$0xff]   ;;  %v3063_v11 = vld [vmem:[%s3947_s2 + $0x90] sm:$0xff]   ;;  %v3397_v48 = vsub.s32 0, %v3381_v36 }
   0x5   :  { %2870 = vmatpush3.bf16.msra.mxu1 %v3055_v3  ;;  %v3064_v12 = vld [vmem:[%s3947_s2 + $0x58] sm:$0xff]   ;;  %v3068_v16 = vld [vmem:[%s3947_s2 + $0x60] sm:$0xff]   ;;  %v3072_v20 = vld [vmem:[%s3947_s2 + $0x68] sm:$0xff]   ;;  %v3390_v41 = vsub.s32 %v51_v39, %v3381_v36 }
   0x6   :  { %2871 = vmatprep.subr.bf16.mxu1 %v3058_v6  ;;  %v3065_v13 = vld [vmem:[%s3947_s2 + $0x18] sm:$0xff]   ;;  %v3069_v17 = vld [vmem:[%s3947_s2 + $0x20] sm:$0xff]   ;;  %v3073_v21 = vld [vmem:[%s3947_s2 + $0x28] sm:$0xff]  }
   0x7   :  { %2850 = vmatpush3.bf16.msra.mxu0 %v3057_v5  ;;  %v3066_v14 = vld [vmem:[%s3947_s2 + $0xd8] sm:$0xff]   ;;  %v3070_v18 = vld [vmem:[%s3947_s2 + $0xe0] sm:$0xff]   ;;  %v3074_v22 = vld [vmem:[%s3947_s2 + $0xe8] sm:$0xff]  }
   0x8   :  { %2851 = vmatprep.subr.bf16.mxu0 %v3060_v8  ;;  %v3067_v15 = vld [vmem:[%s3947_s2 + $0x98] sm:$0xff]   ;;  %v3071_v19 = vld [vmem:[%s3947_s2 + $0xa0] sm:$0xff]   ;;  %v3075_v23 = vld [vmem:[%s3947_s2 + $0xa8] sm:$0xff]  }
   0x9   :  { %2872 = vmatpush3.bf16.msra.mxu1 %v3059_v7  ;;  %v3076_v24 = vld [vmem:[%s3947_s2 + $0x70] sm:$0xff]   ;;  %v3080_v28 = vld [vmem:[%s3947_s2 + $0x78] sm:$0xff]   ;;  %v46_v33 = vld [vmem:[%s3946_s1] sm:$0xff] }
   0xa   :  { %2873 = vmatprep.subr.bf16.mxu1 %v3062_v10  ;;  %v3077_v25 = vld [vmem:[%s3947_s2 + $0x30] sm:$0xff]   ;;  %v3081_v29 = vld [vmem:[%s3947_s2 + $0x38] sm:$0xff]   ;;  %v3085_v37 = vld [vmem:[%s3947_s2 + $0x140] sm:$0xff]   ;;  %v48_v38 = vcombine.high %v46_v33, %v46_v33  ;;  %v55_v42 = vrot.slane %v46_v33, %v3390_v41 }
   0xb   :  { %2852 = vmatpush3.bf16.msra.mxu0 %v3061_v9  ;;  %v3078_v26 = vld [vmem:[%s3947_s2 + $0xf0] sm:$0xff]   ;;  %v3082_v31 = vld [vmem:[%s3947_s2 + $0xf8] sm:$0xff]   ;;  %v3087_v40 = vld [vmem:[%s3947_s2 + $0x1c0] sm:$0xff]  }
   0xc   :  { %2853 = vmatprep.subr.bf16.mxu0 %v3064_v12  ;;  %v3079_v27 = vld [vmem:[%s3947_s2 + $0xb0] sm:$0xff]   ;;  %v3083_v32 = vld [vmem:[%s3947_s2 + $0xb8] sm:$0xff]   ;;  %v62_v43 = vrot.slane %v48_v38, %v3390_v41  ;;  %v63_v44 = vcombine.high %v55_v42, %v55_v42  ;;  %v71_v46 = vrot.slane %v55_v42, %v3390_v41  ;;  %v3088_v30 = vld [vmem:[%s3947_s2 + $0x180] sm:$0xff]  }
   0xd   :  { %2874 = vmatpush3.bf16.msra.mxu1 %v3063_v11  ;;  %v3089_v33 = vld [vmem:[%s3947_s2 + $0x148] sm:$0xff]   ;;  %v3093_v42 = vld [vmem:[%s3947_s2 + $0x150] sm:$0xff]  }
   0xe   :  { %2875 = vmatprep.subr.bf16.mxu1 %v3066_v14  ;;  %v64_v45 = vcombine.high %v62_v43, %v62_v43  ;;  %v78_v47 = vrot.slane %v62_v43, %v3390_v41  ;;  %v85_v49 = vrot.slane %v63_v44, %v3390_v41  ;;  %v93_v51 = vcombine.high %v71_v46, %v71_v46  ;;  %v3090_v35 = vld [vmem:[%s3947_s2 + $0x108] sm:$0xff]   ;;  %v3094_v43 = vld [vmem:[%s3947_s2 + $0x110] sm:$0xff]  }
   0xf   :  { %2854 = vmatpush3.bf16.msra.mxu0 %v3065_v13  ;;  %v147_v53 = vpack.i.b16 %v71_v46, %v71_v46  ;;  %v3091_v38 = vld [vmem:[%s3947_s2 + $0x1c8] sm:$0xff]   ;;  %v3095_v44 = vld [vmem:[%s3947_s2 + $0x1d0] sm:$0xff]   ;;  %v3097_v46 = vld [vmem:[%s3947_s2 + $0x158] sm:$0xff]  }
  0x10   :  { %2855 = vmatprep.subr.bf16.mxu0 %v3068_v16  ;;  %v92_v50 = vrot.slane %v64_v45, %v3390_v41  ;;  %v94_v52 = vcombine.high %v78_v47, %v78_v47  ;;  %v171_v54 = vpack.i.b16 %v78_v47, %v78_v47  ;;  %v95_v55 = vcombine.high %v85_v49, %v85_v49  ;;  %v3092_v39 = vld [vmem:[%s3947_s2 + $0x188] sm:$0xff]   ;;  %v3096_v45 = vld [vmem:[%s3947_s2 + $0x190] sm:$0xff]   ;;  %v3098_v47 = vld [vmem:[%s3947_s2 + $0x118] sm:$0xff]  }
  0x11   :  { %2876 = vmatpush3.bf16.msra.mxu1 %v3067_v15  ;;  %v153_v57 = vpack.i.b16 %v85_v49, %v85_v49  ;;  %v159_v58 = vpack.i.b16 %v93_v51, %v93_v51  ;;  %v151_v59 = vrot.slane %v147_v53, %v3397_v48  ;;  %v3099_v49 = vld [vmem:[%s3947_s2 + $0x1d8] sm:$0xff]   ;;  %v3101_v51 = vld [vmem:[%s3947_s2 + $0x160] sm:$0xff]  }
  0x12   :  { %2877 = vmatprep.subr.bf16.mxu1 %v3070_v18  ;;  %v96_v56 = vcombine.high %v92_v50, %v92_v50  ;;  %v175_v60 = vrot.slane %v171_v54, %v3397_v48  ;;  %v177_v61 = vpack.i.b16 %v92_v50, %v92_v50  ;;  %v183_v62 = vpack.i.b16 %v94_v52, %v94_v52  ;;  %v3100_v50 = vld [vmem:[%s3947_s2 + $0x198] sm:$0xff]   ;;  %v3102_v52 = vld [vmem:[%s3947_s2 + $0x120] sm:$0xff]  }
  0x13   :  { %2856 = vmatpush3.bf16.msra.mxu0 %v3069_v17  ;;  %v157_v63 = vrot.slane %v153_v57, %v3397_v48  ;;  %v163_v0 = vrot.slane %v159_v58, %v3397_v48  ;;  %v165_v1 = vpack.i.b16 %v95_v55, %v95_v55  ;;  %v3103_v53 = vld [vmem:[%s3947_s2 + $0x1e0] sm:$0xff]   ;;  %v3105_v55 = vld [vmem:[%s3947_s2 + $0x168] sm:$0xff]  }
  0x14   :  { %2857 = vmatprep.subr.bf16.mxu0 %v3072_v20  ;;  %v189_v2 = vpack.i.b16 %v96_v56, %v96_v56  ;;  %v181_v3 = vrot.slane %v177_v61, %v3397_v48  ;;  %v187_v4 = vrot.slane %v183_v62, %v3397_v48  ;;  %v3104_v54 = vld [vmem:[%s3947_s2 + $0x1a0] sm:$0xff]   ;;  %v3106_v56 = vld [vmem:[%s3947_s2 + $0x128] sm:$0xff]   ;;  %v3111_v61 = vld [vmem:[%s3947_s2 + $0x1f0] sm:$0xff]  }
  0x15   :  { %2878 = vmatpush3.bf16.msra.mxu1 %v3071_v19  ;;  %v169_v5 = vrot.slane %v165_v1, %v3397_v48  ;;  %v242_v7 = vcombine.low %v151_v59, %v157_v63  ;;  %v44_v19 = vld [vmem:[%s3945_s0] sm:$0xff]  ;;  %v3107_v57 = vld [vmem:[%s3947_s2 + $0x1e8] sm:$0xff]   ;;  %v3109_v59 = vld [vmem:[%s3947_s2 + $0x170] sm:$0xff]  }
  0x16   :  { %2879 = vmatprep.subr.bf16.mxu1 %v3074_v22  ;;  %v193_v6 = vrot.slane %v189_v2, %v3397_v48  ;;  %v244_v8 = vcombine.low %v175_v60, %v181_v3  ;;  %v3108_v58 = vld [vmem:[%s3947_s2 + $0x1a8] sm:$0xff]   ;;  %v3110_v60 = vld [vmem:[%s3947_s2 + $0x130] sm:$0xff]   ;;  %v3113_v63 = vld [vmem:[%s3947_s2 + $0x178] sm:$0xff]  }
  0x17   :  { %2858 = vmatpush3.bf16.msra.mxu0 %v3073_v21  ;;  %v243_v9 = vcombine.low %v163_v0, %v169_v5  ;;  %v252_v11 = vrot.slane %v242_v7, %v3390_v41  ;;  %v3211_v21 = vmov 0   ;;  %v3112_v62 = vld [vmem:[%s3947_s2 + $0x1b0] sm:$0xff]   ;;  %v3114_v0 = vld [vmem:[%s3947_s2 + $0x138] sm:$0xff]   ;;  %v3117_v3 = vld [vmem:[%s3947_s2 + $0x240] sm:$0xff]  }
  0x18   :  { %2859 = vmatprep.subr.bf16.mxu0 %v3076_v24  ;;  %v245_v10 = vcombine.low %v187_v4, %v193_v6  ;;  %v266_v12 = vrot.slane %v244_v8, %v3390_v41  ;;  %v3115_v1 = vld [vmem:[%s3947_s2 + $0x1f8] sm:$0xff]   ;;  %v47_v5 = vld [vmem:[%s3946_s1 + $0x8] sm:$0xff]  ;;  %v3118_v6 = vld [vmem:[%s3947_s2 + $0x200] sm:$0xff]  }
  0x19   :  { %2880 = vmatpush3.bf16.msra.mxu1 %v3075_v23  ;;  %v259_v13 = vrot.slane %v243_v9, %v3390_v41  ;;  %v3116_v2 = vld [vmem:[%s3947_s2 + $0x1b8] sm:$0xff]   ;;  %v97_v7 = vcombine.high %v47_v5, %v47_v5  ;;  %v104_v8 = vrot.slane %v47_v5, %v3390_v41  ;;  %v3119_v9 = vld [vmem:[%s3947_s2 + $0x2c0] sm:$0xff]  }
  0x1a   :  { %2881 = vmatprep.subr.bf16.mxu1 %v3078_v26  ;;  %v273_v14 = vrot.slane %v245_v10, %v3390_v41  ;;  %v3120_v10 = vld [vmem:[%s3947_s2 + $0x280] sm:$0xff]  }
  0x1b   :  { %2860 = vmatpush3.bf16.msra.mxu0 %v3077_v25  ;;  %v274_v15 = vcombine.low %v252_v11, %v259_v13  ;;  %v111_v11 = vrot.slane %v97_v7, %v3390_v41  ;;  %v120_v13 = vrot.slane %v104_v8, %v3390_v41  ;;  %v3139_v7 = vld [vmem:[%s3947_s2 + $0x2e8] sm:$0xff]  }
  0x1c   :  { %2861 = vmatprep.subr.bf16.mxu0 %v3080_v28  ;;  %v275_v16 = vcombine.low %v266_v12, %v273_v14  ;;  %v3086_v28 = vld [vmem:[%s3947_s2 + $0x100] sm:$0xff]   ;;  %v112_v12 = vcombine.high %v104_v8, %v104_v8 }
  0x1d   :  { %2882 = vmatpush3.bf16.msra.mxu1 %v3079_v27  ;;  %v282_v17 = vrot.slane %v274_v15, %v3390_v41  ;;  %v3121_v15 = vld [vmem:[%s3947_s2 + $0x248] sm:$0xff]  }
  0x1e   :  { %2883 = vmatprep.subr.bf16.mxu1 %v3082_v31  ;;  %v289_v18 = vrot.slane %v275_v16, %v3390_v41  ;;  %v3122_v16 = vld [vmem:[%s3947_s2 + $0x208] sm:$0xff]  }
  0x1f   :  { %2862 = vmatpush3.bf16.msra.mxu0 %v3081_v29 }
  0x20   :  { %2891 = vmatprep.subr.bf16.mxu0 %v3085_v37  ;;  %v290_v20 = vcombine.low %v282_v17, %v289_v18  ;;  %v113_v17 = vcombine.high %v111_v11, %v111_v11  ;;  %v127_v18 = vrot.slane %v111_v11, %v3390_v41 }
  0x21   :  { %2884 = vmatpush3.bf16.msra.mxu1 %v3083_v32 }
  0x22   :  { %2913 = vmatprep.subr.bf16.mxu1 %v3087_v40  ;;  %vm340_vm0 = vcmp.eq.s16.totalorder %v44_v19, %v290_v20  ;;  %v134_v19 = vrot.slane %v112_v12, %v3390_v41  ;;  %v142_v20 = vcombine.high %v120_v13, %v120_v13  ;;  %v3141_v12 = vld [vmem:[%s3947_s2 + $0x270] sm:$0xff]  }
  0x23   :  { %v342_v22 = vsel %vm340_vm0, 1065369472, %v3211_v21 }
  0x24   :  { %v609_v23 = vcombine.high %v342_v22, %v342_v22  ;;  %v616_v24 = vrot.slane %v342_v22, %v3390_v41  ;;  %v3123_v22 = vld [vmem:[%s3947_s2 + $0x2c8] sm:$0xff]  }
  0x26   :  { %v624_v25 = vcombine.high %v616_v24, %v616_v24  ;;  %v632_v26 = vrot.slane %v616_v24, %v3390_v41  ;;  %v3422_v27 = vrot.slane %v609_v23, %v3390_v41  ;;  %v195_v23 = vpack.i.b16 %v120_v13, %v120_v13  ;;  %v3124_v24 = vld [vmem:[%s3947_s2 + $0x288] sm:$0xff]  }
  0x27   :  { %v3140_v13 = vld [vmem:[%s3947_s2 + $0x2a8] sm:$0xff]  }
  0x28   :  { %v646_v29 = vrot.slane %v624_v25, %v3390_v41  ;;  %v625_v31 = vcombine.high %v3422_v27, %v3422_v27  ;;  %v654_v32 = vcombine.high %v632_v26, %v632_v26  ;;  %v639_v4 = vrot.slane %v3422_v27, %v3390_v41 }
  0x29   :  { %v141_v25 = vrot.slane %v113_v17, %v3390_v41  ;;  %v144_v27 = vcombine.high %v134_v19, %v134_v19 }
  0x2a   :  { %1523 = vmatprep.mubr.bf16.mxu0 %v646_v29  ;;  %v656_v34 = vcombine.high %v646_v29, %v646_v29  ;;  %v653_v37 = vrot.slane %v625_v31, %v3390_v41  ;;  %v655_v14 = vcombine.high %v639_v4, %v639_v4  ;;  %v3125_v29 = vld [vmem:[%s3947_s2 + $0x250] sm:$0xff]   ;;  %v207_v31 = vpack.i.b16 %v142_v20, %v142_v20 }
  0x2b   :  { %1524 = vmatmul.mubr.bf16.vlgmr.msra.gmra.mrb[0].mxu0 %v632_v26  ;;  %v143_v26 = vcombine.high %v127_v18, %v127_v18  ;;  %v3144_v20 = vld [vmem:[%s3947_s2 + $0x2b0] sm:$0xff]  }
  0x2c   :  { %2892 = vmatpush3.bf16.msra.mxu0 %v3086_v28  ;;  %1563 = vmatprep.mubr.bf16.mxu1 %v656_v34  ;;  %v657_v40 = vcombine.high %v653_v37, %v653_v37  ;;  %v201_v28 = vpack.i.b16 %v134_v19, %v134_v19  ;;  %v145_v34 = vcombine.high %v141_v25, %v141_v25  ;;  %v3145_v19 = vld [vmem:[%s3947_s2 + $0x278] sm:$0xff]  }
  0x2d   :  { %1564 = vmatmul.mubr.bf16.vlgmr.msra.gmra.mrb[0].mxu1 %v654_v32  ;;  %2893 = vmatprep.subr.bf16.mxu0 %v3089_v33  ;;  %v219_v32 = vpack.i.b16 %v127_v18, %v127_v18  ;;  %v3126_v33 = vld [vmem:[%s3947_s2 + $0x210] sm:$0xff]  }
  0x2e   :  { %2914 = vmatpush3.bf16.msra.mxu1 %v3088_v30  ;;  %1603 = vmatprep.mubr.bf16.mxu0 %v653_v37  ;;  %v199_v30 = vrot.slane %v195_v23, %v3397_v48  ;;  %v213_v37 = vpack.i.b16 %v144_v27, %v144_v27 }
  0x2f   :  { %2915 = vmatprep.subr.bf16.mxu1 %v3091_v38  ;;  %1643 = vmatprep.mubr.bf16.mxu1 %v657_v40  ;;  %v225_v38 = vpack.i.b16 %v141_v25, %v141_v25  ;;  %v211_v40 = vrot.slane %v207_v31, %v3397_v48  ;;  %v3146_v25 = vld [vmem:[%s3947_s2 + $0x238] sm:$0xff]  }
  0x30   :  { %2894 = vmatpush3.bf16.msra.mxu0 %v3090_v35  ;;  %v205_v35 = vrot.slane %v201_v28, %v3397_v48 }
  0x31   :  { %2895 = vmatprep.subr.bf16.mxu0 %v3093_v42  ;;  %v223_v42 = vrot.slane %v219_v32, %v3397_v48 }
  0x32   :  { %2916 = vmatpush3.bf16.msra.mxu1 %v3092_v39  ;;  %v3127_v39 = vld [vmem:[%s3947_s2 + $0x2d0] sm:$0xff]  }
  0x33   :  { %2917 = vmatprep.subr.bf16.mxu1 %v3095_v44  ;;  %v3128_v44 = vld [vmem:[%s3947_s2 + $0x290] sm:$0xff]  }
  0x34   :  { %2896 = vmatpush3.bf16.msra.mxu0 %v3094_v43  ;;  %v231_v43 = vpack.i.b16 %v143_v26, %v143_v26 }
  0x35   :  { %2897 = vmatprep.subr.bf16.mxu0 %v3097_v46  ;;  %v229_v46 = vrot.slane %v225_v38, %v3397_v48 }
  0x36   :  { %2918 = vmatpush3.bf16.msra.mxu1 %v3096_v45  ;;  %v217_v45 = vrot.slane %v213_v37, %v3397_v48 }
  0x37   :  { %2919 = vmatprep.subr.bf16.mxu1 %v3099_v49  ;;  %v291_v49 = vcombine.low %v199_v30, %v205_v35  ;;  %v3149_v30 = vld [vmem:[%s3947_s2 + $0x2b8] sm:$0xff]  }
  0x38   :  { %2898 = vmatpush3.bf16.msra.mxu0 %v3098_v47  ;;  %v237_v47 = vpack.i.b16 %v145_v34, %v145_v34 }
  0x39   :  { %2899 = vmatprep.subr.bf16.mxu0 %v3101_v51  ;;  %v235_v51 = vrot.slane %v231_v43, %v3397_v48 }
  0x3a   :  { %2920 = vmatpush3.bf16.msra.mxu1 %v3100_v50  ;;  %v3129_v50 = vld [vmem:[%s3947_s2 + $0x258] sm:$0xff]  }
  0x3b   :  { %2921 = vmatprep.subr.bf16.mxu1 %v3103_v53  ;;  %v241_v53 = vrot.slane %v237_v47, %v3397_v48 }
  0x3c   :  { %2900 = vmatpush3.bf16.msra.mxu0 %v3102_v52  ;;  %v3130_v52 = vld [vmem:[%s3947_s2 + $0x218] sm:$0xff]  }
  0x3d   :  { %2901 = vmatprep.subr.bf16.mxu0 %v3105_v55  ;;  %v293_v55 = vcombine.low %v223_v42, %v229_v46 }
  0x3e   :  { %2922 = vmatpush3.bf16.msra.mxu1 %v3104_v54  ;;  %v292_v54 = vcombine.low %v211_v40, %v217_v45 }
  0x3f   :  { %2923 = vmatprep.subr.bf16.mxu1 %v3107_v57  ;;  %v3131_v57 = vld [vmem:[%s3947_s2 + $0x2d8] sm:$0xff]  }
  0x40   :  { %2902 = vmatpush3.bf16.msra.mxu0 %v3106_v56  ;;  %v301_v56 = vrot.slane %v291_v49, %v3390_v41 }
  0x41   :  { %2903 = vmatprep.subr.bf16.mxu0 %v3109_v59  ;;  %v294_v59 = vcombine.low %v235_v51, %v241_v53 }
  0x42   :  { %2924 = vmatpush3.bf16.msra.mxu1 %v3108_v58  ;;  %v3132_v58 = vld [vmem:[%s3947_s2 + $0x298] sm:$0xff]  }
  0x43   :  { %2925 = vmatprep.subr.bf16.mxu1 %v3111_v61  ;;  %v315_v61 = vrot.slane %v293_v55, %v3390_v41 }
  0x44   :  { %2904 = vmatpush3.bf16.msra.mxu0 %v3110_v60  ;;  %v308_v60 = vrot.slane %v292_v54, %v3390_v41 }
  0x45   :  { %2905 = vmatprep.subr.bf16.mxu0 %v3113_v63  ;;  %v3134_v63 = vld [vmem:[%s3947_s2 + $0x220] sm:$0xff]  }
  0x46   :  { %2926 = vmatpush3.bf16.msra.mxu1 %v3112_v62  ;;  %v3133_v62 = vld [vmem:[%s3947_s2 + $0x260] sm:$0xff]  }
  0x47   :  { %2927 = vmatprep.subr.bf16.mxu1 %v3115_v1  ;;  %v323_v1 = vcombine.low %v301_v56, %v308_v60 }
  0x48   :  { %2906 = vmatpush3.bf16.msra.mxu0 %v3114_v0  ;;  %v322_v0 = vrot.slane %v294_v59, %v3390_v41 }
  0x49   :  { %2935 = vmatprep.subr.bf16.mxu0 %v3117_v3  ;;  %v3136_v3 = vld [vmem:[%s3947_s2 + $0x2a0] sm:$0xff]   ;;  %v331_v5 = vrot.slane %v323_v1, %v3390_v41 }
  0x4a   :  { %2928 = vmatpush3.bf16.msra.mxu1 %v3116_v2  ;;  %v3135_v2 = vld [vmem:[%s3947_s2 + $0x2e0] sm:$0xff]  }
  0x4b   :  { %1604 = vmatmul.mubr.bf16.vlgmr.msra.gmra.mrb[4].mxu0 %v639_v4  ;;  %2957 = vmatprep.subr.bf16.mxu1 %v3119_v9  ;;  %v324_v4 = vcombine.low %v315_v61, %v322_v0  ;;  %v45_v9 = vld [vmem:[%s3945_s0 + $0x8] sm:$0xff] }
  0x4c   :  { %2936 = vmatpush3.bf16.msra.mxu0 %v3118_v6  ;;  %v3137_v6 = vld [vmem:[%s3947_s2 + $0x268] sm:$0xff]  }
  0x4d   :  { %1644 = vmatmul.mubr.bf16.vlgmr.msra.gmra.mrb[4].mxu1 %v655_v14  ;;  %2937 = vmatprep.subr.bf16.mxu0 %v3121_v15  ;;  %v338_v8 = vrot.slane %v324_v4, %v3390_v41  ;;  %v3142_v14 = vld [vmem:[%s3947_s2 + $0x230] sm:$0xff]  }
  0x4e   :  { %2958 = vmatpush3.bf16.msra.mxu1 %v3120_v10  ;;  %v3138_v10 = vld [vmem:[%s3947_s2 + $0x228] sm:$0xff]   ;;  %v3143_v15 = vld [vmem:[%s3947_s2 + $0x2f0] sm:$0xff]  }
  0x4f   :  { %2959 = vmatprep.subr.bf16.mxu1 %v3123_v22  ;;  %v339_v11 = vcombine.low %v331_v5, %v338_v8 }
  0x50   :  { %2938 = vmatpush3.bf16.msra.mxu0 %v3122_v16 }
  0x51   :  { %2939 = vmatprep.subr.bf16.mxu0 %v3125_v29  ;;  %vm341_vm1 = vcmp.eq.s16.totalorder %v45_v9, %v339_v11  ;;  %v3150_v29 = vld [vmem:[%s3947_s2 + $0x340] sm:$0xff]  }
  0x52   :  { %2960 = vmatpush3.bf16.msra.mxu1 %v3124_v24  ;;  %v343_v16 = vsel %vm341_vm1, 1065369472, %v3211_v21  ;;  %v3147_v24 = vld [vmem:[%s3947_s2 + $0x2f8] sm:$0xff]  }
  0x53   :  { %2961 = vmatprep.subr.bf16.mxu1 %v3127_v39  ;;  %v665_v17 = vrot.slane %v343_v16, %v3390_v41  ;;  %v658_v18 = vcombine.high %v343_v16, %v343_v16 }
  0x54   :  { %2940 = vmatpush3.bf16.msra.mxu0 %v3126_v33 }
  0x55   :  { %2941 = vmatprep.subr.bf16.mxu0 %v3129_v50  ;;  %v673_v22 = vcombine.high %v665_v17, %v665_v17  ;;  %v3636_v23 = vrot.slane %v658_v18, %v3390_v41  ;;  %v681_v28 = vrot.slane %v665_v17, %v3390_v41 }
  0x56   :  { %2962 = vmatpush3.bf16.msra.mxu1 %v3128_v44 }
  0x57   :  { %2963 = vmatprep.subr.bf16.mxu1 %v3131_v57  ;;  %v695_v26 = vrot.slane %v673_v22, %v3390_v41  ;;  %v674_v27 = vcombine.high %v3636_v23, %v3636_v23 }
  0x58   :  { %2942 = vmatpush3.bf16.msra.mxu0 %v3130_v52 }
  0x59   :  { %2943 = vmatprep.subr.bf16.mxu0 %v3133_v62  ;;  %1683 = vmatprep.mubr.bf16.mxu0 %v695_v26  ;;  %v705_v31 = vcombine.high %v695_v26, %v695_v26  ;;  %v702_v32 = vrot.slane %v674_v27, %v3390_v41 }
  0x5a   :  { %2964 = vmatpush3.bf16.msra.mxu1 %v3132_v58 }
  0x5b   :  { %2965 = vmatprep.subr.bf16.mxu1 %v3135_v2 }
  0x5c   :  { %2944 = vmatpush3.bf16.msra.mxu0 %v3134_v63 }
  0x5d   :  { %2945 = vmatprep.subr.bf16.mxu0 %v3137_v6 }
  0x5e   :  { %2966 = vmatpush3.bf16.msra.mxu1 %v3136_v3 }
  0x5f   :  { %2967 = vmatprep.subr.bf16.mxu1 %v3139_v7 }
  0x60   :  { %2946 = vmatpush3.bf16.msra.mxu0 %v3138_v10 }
  0x61   :  { %2947 = vmatprep.subr.bf16.mxu0 %v3141_v12 }
  0x62   :  { %2968 = vmatpush3.bf16.msra.mxu1 %v3140_v13 }
  0x63   :  { %2969 = vmatprep.subr.bf16.mxu1 %v3143_v15 }
  0x64   :  { %2948 = vmatpush3.bf16.msra.mxu0 %v3142_v14 }
  0x65   :  { %2949 = vmatprep.subr.bf16.mxu0 %v3145_v19 }
  0x66   :  { %2970 = vmatpush3.bf16.msra.mxu1 %v3144_v20 }
  0x67   :  { %17 = vsyncpa [#allocation3], 0  ;;  %2971 = vmatprep.subr.bf16.mxu1 %v3147_v24  ;;  %v3152_v33 = vld [vmem:[%s3947_s2 + $0x3c0] sm:$0xff]   ;;  %1723 = vmatprep.mubr.bf16.mxu1 %v705_v31  ;;  %v703_v35 = vcombine.high %v681_v28, %v681_v28  ;;  %v3154_v37 = vld [vmem:[%s3947_s2 + $0x348] sm:$0xff]   ;;  %v706_v39 = vcombine.high %v702_v32, %v702_v32  ;;  %v688_v4 = vrot.slane %v3636_v23, %v3390_v41  ;;  %vm1813_vm2 = vcmask 254976  }
  0x68   :  { %2950 = vmatpush3.bf16.msra.mxu0 %v3146_v25  ;;  %v3151_v34 = vld [vmem:[%s3947_s2 + $0x300] sm:$0xff]   ;;  %v3156_v40 = vld [vmem:[%s3947_s2 + $0x3c8] sm:$0xff]   ;;  %v3158_v43 = vld [vmem:[%s3947_s2 + $0x350] sm:$0xff]   ;;  %vm3213_vm3 = vmmov 0   ;;  %vm1854_vm4 = vcmask 261120  }
  0x69   :  { %2979 = vmatprep.subr.bf16.mxu0 %v3150_v29  ;;  %v3153_v38 = vld [vmem:[%s3947_s2 + $0x380] sm:$0xff]   ;;  %v3155_v42 = vld [vmem:[%s3947_s2 + $0x308] sm:$0xff]   ;;  %v3160_v45 = vld [vmem:[%s3947_s2 + $0x3d0] sm:$0xff]   ;;  %v704_v6 = vcombine.high %v688_v4, %v688_v4 }
  0x6a   :  { %2972 = vmatpush3.bf16.msra.mxu1 %v3149_v30  ;;  %v3157_v44 = vld [vmem:[%s3947_s2 + $0x388] sm:$0xff]   ;;  %v3159_v46 = vld [vmem:[%s3947_s2 + $0x310] sm:$0xff]   ;;  %v3162_v47 = vld [vmem:[%s3947_s2 + $0x358] sm:$0xff]  }
  0x6b   :  { %1684 = vmatmul.mubr.bf16.vlgmr.msra.gmra.mrb[8].mxu0 %v681_v28  ;;  %3001 = vmatprep.subr.bf16.mxu1 %v3152_v33  ;;  %v3161_v49 = vld [vmem:[%s3947_s2 + $0x390] sm:$0xff]   ;;  %v3164_v50 = vld [vmem:[%s3947_s2 + $0x3d8] sm:$0xff]   ;;  %v3166_v52 = vld [vmem:[%s3947_s2 + $0x360] sm:$0xff]  }
  0x6c   :  { %2980 = vmatpush3.bf16.msra.mxu0 %v3151_v34  ;;  %1763 = vmatprep.mubr.bf16.mxu0 %v702_v32  ;;  %v3163_v51 = vld [vmem:[%s3947_s2 + $0x318] sm:$0xff]   ;;  %v3168_v54 = vld [vmem:[%s3947_s2 + $0x3e0] sm:$0xff]   ;;  %v3170_v56 = vld [vmem:[%s3947_s2 + $0x368] sm:$0xff]  }
  0x6d   :  { %1724 = vmatmul.mubr.bf16.vlgmr.msra.gmra.mrb[8].mxu1 %v703_v35  ;;  %2981 = vmatprep.subr.bf16.mxu0 %v3154_v37  ;;  %v3165_v53 = vld [vmem:[%s3947_s2 + $0x398] sm:$0xff]   ;;  %v3167_v55 = vld [vmem:[%s3947_s2 + $0x320] sm:$0xff]   ;;  %v3172_v58 = vld [vmem:[%s3947_s2 + $0x3e8] sm:$0xff]  }
  0x6e   :  { %3002 = vmatpush3.bf16.msra.mxu1 %v3153_v38  ;;  %1803 = vmatprep.mubr.bf16.mxu1 %v706_v39  ;;  %v3169_v57 = vld [vmem:[%s3947_s2 + $0x3a0] sm:$0xff]   ;;  %v3171_v59 = vld [vmem:[%s3947_s2 + $0x328] sm:$0xff]   ;;  %v3174_v60 = vld [vmem:[%s3947_s2 + $0x370] sm:$0xff]  }
  0x6f   :  { %3003 = vmatprep.subr.bf16.mxu1 %v3156_v40  ;;  %v3173_v61 = vld [vmem:[%s3947_s2 + $0x3a8] sm:$0xff]   ;;  %v3176_v62 = vld [vmem:[%s3947_s2 + $0x3f0] sm:$0xff]   ;;  %v3178_v0 = vld [vmem:[%s3947_s2 + $0x378] sm:$0xff]  }
  0x70   :  { %2982 = vmatpush3.bf16.msra.mxu0 %v3155_v42  ;;  %v3175_v63 = vld [vmem:[%s3947_s2 + $0x330] sm:$0xff]   ;;  %v3180_v2 = vld [vmem:[%s3947_s2 + $0x3f8] sm:$0xff]   ;;  %v2672_v8 = vld [vmem:[%s3948_s3] ss:$0 sm:$0xff] }
  0x71   :  { %2983 = vmatprep.subr.bf16.mxu0 %v3158_v43  ;;  %v3177_v1 = vld [vmem:[%s3947_s2 + $0x3b0] sm:$0xff]   ;;  %v3179_v3 = vld [vmem:[%s3947_s2 + $0x338] sm:$0xff]  }
  0x72   :  { %3004 = vmatpush3.bf16.msra.mxu1 %v3157_v44  ;;  %v3181_v5 = vld [vmem:[%s3947_s2 + $0x3b8] sm:$0xff]  }
  0x73   :  { %3005 = vmatprep.subr.bf16.mxu1 %v3160_v45 }
  0x74   :  { %2984 = vmatpush3.bf16.msra.mxu0 %v3159_v46 }
  0x75   :  { %2985 = vmatprep.subr.bf16.mxu0 %v3162_v47 }
  0x76   :  { %3006 = vmatpush3.bf16.msra.mxu1 %v3161_v49 }
  0x77   :  { %3007 = vmatprep.subr.bf16.mxu1 %v3164_v50 }
  0x78   :  { %2986 = vmatpush3.bf16.msra.mxu0 %v3163_v51 }
  0x79   :  { %2987 = vmatprep.subr.bf16.mxu0 %v3166_v52 }
  0x7a   :  { %3008 = vmatpush3.bf16.msra.mxu1 %v3165_v53 }
  0x7b   :  { %3009 = vmatprep.subr.bf16.mxu1 %v3168_v54 }
  0x7c   :  { %2988 = vmatpush3.bf16.msra.mxu0 %v3167_v55 }
  0x7d   :  { %2989 = vmatprep.subr.bf16.mxu0 %v3170_v56 }
  0x7e   :  { %3010 = vmatpush3.bf16.msra.mxu1 %v3169_v57 }
  0x7f   :  { %3011 = vmatprep.subr.bf16.mxu1 %v3172_v58 }
  0x80   :  { %2990 = vmatpush3.bf16.msra.mxu0 %v3171_v59 }
  0x81   :  { %2991 = vmatprep.subr.bf16.mxu0 %v3174_v60 }
  0x82   :  { %3012 = vmatpush3.bf16.msra.mxu1 %v3173_v61 }
  0x83   :  { %3013 = vmatprep.subr.bf16.mxu1 %v3176_v62 }
  0x84   :  { %2992 = vmatpush3.bf16.msra.mxu0 %v3175_v63 }
  0x85   :  { %2993 = vmatprep.subr.bf16.mxu0 %v3178_v0 }
  0x86   :  { %3014 = vmatpush3.bf16.msra.mxu1 %v3177_v1  ;;  %v1843_v1 = vld [vmem:[%s3951_s6] sm:$0xff] }
  0x87   :  { %3015 = vmatprep.subr.bf16.mxu1 %v3180_v2  ;;  %v1844_v2 = vld [vmem:[%s3951_s6 + $0x8] sm:$0xff] }
  0x88   :  { %2994 = vmatpush3.bf16.msra.mxu0 %v3179_v3  ;;  %v3040_v3 = vpack.c.bf16 %v1844_v2, %v1843_v1  ;;  %v1977_v1 = vld [vmem:[%s3955_s10 + $0x90] sm:$0xff] }
  0x89   :  { %v1985_v2 = vld [vmem:[%s3955_s10 + $0xd0] sm:$0xff] }
  0x8a   :  { %3016 = vmatpush3.bf16.msra.mxu1 %v3181_v5  ;;  %v1845_v5 = vld [vmem:[%s3951_s6 + $0x10] sm:$0xff] }
  0x8b   :  { %1764 = vmatmul.mubr.bf16.vlgmr.msra.gmra.mrb[12].mxu0 %v688_v4  ;;  %v3212_v4 = vmov 0.0|0.0  }
  0x8c   :  { %3039 = vmatprep.subr.bf16.mxu0 %v3212_v4 }
  0x8d   :  { %1804 = vmatmul.mubr.bf16.vlgmr.msra.gmra.mrb[12].mxu1 %v704_v6  ;;  %3041 = vmatpush3.bf16.msra.mxu0 %v3040_v3  ;;  %v1846_v6 = vld [vmem:[%s3951_s6 + $0x18] sm:$0xff] }
  0x8e   :  { %2270 = vmatprep.mubr.bf16.mxu1 %v3211_v21  ;;  %3042 = vmatprep.subr.bf16.mxu0 %v3212_v4  ;;  %v1978_v3 = vld [vmem:[%s3955_s10 + $0x98] sm:$0xff] }
  0x8f   :  { %v1986_v4 = vld [vmem:[%s3955_s10 + $0xd8] sm:$0xff] }
  0xfe   :  { %v2863_v7 = vpop.f32.mrb[0].mxu0 }
  0xff   :  { %v2864_v9 = vpop.f32.mrb[1].mxu0 }
 0x100   :  { %v2865_v41 = vadd.f32 %v2864_v9, %v2863_v7  ;;  %v2866_v10 = vpop.f32.mrb[2].mxu0  ;;  %v2885_v11 = vpop.f32.mrb[0].mxu1  ;;  %v3043_v7 = vpack.c.bf16 %v1846_v6, %v1845_v5 }
 0x101   :  { %v2867_v12 = vpop.f32.mrb[3].mxu0  ;;  %v2886_v13 = vpop.f32.mrb[1].mxu1 }
 0x102   :  { %v1526_v14 = vadd.f32 %v2865_v41, %v2672_v8  ;;  %v2887_v15 = vadd.f32 %v2886_v13, %v2885_v11  ;;  %v2888_v16 = vpop.f32.mrb[2].mxu1  ;;  %v3214_v8 = vmov 0.0   ;;  %3044 = vmatpush3.bf16.msra.mxu0 %v3043_v7  ;;  %v2801_v12 = vld [vmem:[%s3949_s4] ss:$0 sm:$0xff]  ;;  %v2828_v7 = vcombine.high %v1977_v1, %v1985_v2 }
 0x103   :  { %v2889_v17 = vpop.f32.mrb[3].mxu1  ;;  %3036 = vmatprep.mubr.msk.f32.mxu0 %vm3213_vm3, %v3214_v8  ;;  %v2830_v8 = vcombine.high %v1978_v3, %v1986_v4 }
 0x104   :  { %v1566_v18 = vadd.f32 %v2887_v15, %v1526_v14  ;;  %v2802_v14 = vld [vmem:[%s3950_s5] ss:$0 sm:$0xff] }
 0x11e   :  { %v2907_v19 = vpop.f32.mrb[4].mxu0 }
 0x11f   :  { %v2908_v20 = vpop.f32.mrb[5].mxu0 }
 0x120   :  { %v2909_v22 = vadd.f32 %v2908_v20, %v2907_v19  ;;  %v2910_v23 = vpop.f32.mrb[6].mxu0  ;;  %v2929_v24 = vpop.f32.mrb[4].mxu1 }
 0x121   :  { %v2911_v25 = vpop.f32.mrb[7].mxu0  ;;  %v2930_v26 = vpop.f32.mrb[5].mxu1 }
 0x122   :  { %v1606_v27 = vadd.f32 %v2909_v22, %v1566_v18  ;;  %v2931_v28 = vadd.f32 %v2930_v26, %v2929_v24  ;;  %v2932_v29 = vpop.f32.mrb[6].mxu1  ;;  %v2803_v18 = vld [vmem:[%s3952_s7] ss:$0 sm:$0xff] }
 0x123   :  { %v2933_v30 = vpop.f32.mrb[7].mxu1  ;;  %v1959_v29 = vld [vmem:[%s3955_s10] sm:$0xff] }
 0x124   :  { %v1646_v31 = vadd.f32 %v2931_v28, %v1606_v27  ;;  %v1967_v30 = vld [vmem:[%s3955_s10 + $0x40] sm:$0xff] }
 0x13e   :  { %v2951_v32 = vpop.f32.mrb[8].mxu0 }
 0x13f   :  { %v2952_v33 = vpop.f32.mrb[9].mxu0 }
 0x140   :  { %v2953_v34 = vadd.f32 %v2952_v33, %v2951_v32  ;;  %v2954_v35 = vpop.f32.mrb[10].mxu0  ;;  %v2973_v37 = vpop.f32.mrb[8].mxu1  ;;  %v2808_v32 = vcombine.high %v1959_v29, %v1967_v30  ;;  %v1968_v33 = vld [vmem:[%s3955_s10 + $0x48] sm:$0xff] }
 0x141   :  { %v2955_v38 = vpop.f32.mrb[11].mxu0  ;;  %v2974_v39 = vpop.f32.mrb[9].mxu1 }
 0x142   :  { %v1686_v40 = vadd.f32 %v2953_v34, %v1646_v31  ;;  %v2975_v42 = vadd.f32 %v2974_v39, %v2973_v37  ;;  %v2976_v43 = vpop.f32.mrb[10].mxu1  ;;  %v1960_v31 = vld [vmem:[%s3955_s10 + $0x8] sm:$0xff]  ;;  %v2807_v34 = vcombine.low %v1959_v29, %v1967_v30  ;;  %2238 = vmatprep.subr.bf16.mxu1 %v2808_v32  ;;  %v1975_v38 = vld [vmem:[%s3955_s10 + $0x80] sm:$0xff] }
 0x143   :  { %v2977_v44 = vpop.f32.mrb[11].mxu1  ;;  %v2809_v35 = vcombine.low %v1960_v31, %v1968_v33  ;;  %v2810_v37 = vcombine.high %v1960_v31, %v1968_v33  ;;  %v1983_v39 = vld [vmem:[%s3955_s10 + $0xc0] sm:$0xff]  ;;  %v1984_v43 = vld [vmem:[%s3955_s10 + $0xc8] sm:$0xff]  ;;  %v1981_v33 = vld [vmem:[%s3955_s10 + $0xb0] sm:$0xff] }
 0x144   :  { %v1726_v45 = vadd.f32 %v2975_v42, %v1686_v40  ;;  %2239 = vmatpush1.bf16.msra.mxu1 %v2807_v34  ;;  %v1976_v40 = vld [vmem:[%s3955_s10 + $0x88] sm:$0xff]  ;;  %v2824_v42 = vcombine.high %v1975_v38, %v1983_v39  ;;  %v2823_v44 = vcombine.low %v1975_v38, %v1983_v39  ;;  %v1989_v34 = vld [vmem:[%s3955_s10 + $0xf0] sm:$0xff] }
 0x145   :  { %2279 = vmatprep.subr.bf16.mxu0 %v2810_v37  ;;  %v1990_v37 = vld [vmem:[%s3955_s10 + $0xf8] sm:$0xff] }
 0x146   :  { %2240 = vmatprep.subr.bf16.mxu1 %v2824_v42 }
 0x148   :  { %2241 = vmatpush1.bf16.msra.mxu1 %v2823_v44 }
 0x15e   :  { %v2995_v46 = vpop.f32.mrb[12].mxu0 }
 0x15f   :  { %v2996_v47 = vpop.f32.mrb[13].mxu0 }
 0x160   :  { %v2997_v49 = vadd.f32 %v2996_v47, %v2995_v46  ;;  %v2998_v50 = vpop.f32.mrb[14].mxu0  ;;  %v3017_v51 = vpop.f32.mrb[12].mxu1  ;;  %v2826_v46 = vcombine.high %v1976_v40, %v1984_v43  ;;  %v1961_v47 = vld [vmem:[%s3955_s10 + $0x10] sm:$0xff] }
 0x161   :  { %v2999_v52 = vpop.f32.mrb[15].mxu0  ;;  %v3018_v53 = vpop.f32.mrb[13].mxu1  ;;  %v1962_v50 = vld [vmem:[%s3955_s10 + $0x18] sm:$0xff] }
 0x162   :  { %v1766_v54 = vadd.f32 %v2997_v49, %v1726_v45  ;;  %v3019_v55 = vadd.f32 %v3018_v53, %v3017_v51  ;;  %v3020_v56 = vpop.f32.mrb[14].mxu1  ;;  %v2825_v45 = vcombine.low %v1976_v40, %v1984_v43  ;;  %v1969_v49 = vld [vmem:[%s3955_s10 + $0x50] sm:$0xff]  ;;  %v1970_v53 = vld [vmem:[%s3955_s10 + $0x58] sm:$0xff]  ;;  %v2836_v40 = vcombine.high %v1981_v33, %v1989_v34 }
 0x163   :  { %v3021_v57 = vpop.f32.mrb[15].mxu1  ;;  %v2811_v51 = vcombine.low %v1961_v47, %v1969_v49  ;;  %v2812_v52 = vcombine.high %v1961_v47, %v1969_v49  ;;  %v2835_v43 = vcombine.low %v1981_v33, %v1989_v34  ;;  %v2005_v47 = vsub.s32 2, %v3381_v36  ;;  %v1991_v49 = vld [vmem:[%s3956_s11] sm:$0xff] }
 0x164   :  { %v1806_v58 = vadd.f32 %v3019_v55, %v1766_v54  ;;  %v2813_v54 = vcombine.low %v1962_v50, %v1970_v53  ;;  %v2814_v55 = vcombine.high %v1962_v50, %v1970_v53  ;;  %v2001_v50 = vsub.s32 1, %v3381_v36 }
 0x165   :  { %2320 = vmatprep.subr.bf16.mxu1 %v2812_v52  ;;  %v1998_v52 = vrot.slane %v1991_v49, %v3397_v48  ;;  %v2006_v53 = vrot.slane %v1991_v49, %v2005_v47 }
 0x166   :  { %v1814_v59 = vsel %vm1813_vm2, %v1806_v58, 0.0 }
 0x167   :  { %1815 = vadd.xlane.f32.xlu0 %v1814_v59 }
 0x1f4   :  { %v1816_v60 = vpop.xlane.xlu0 %1815 }
 0x1f5   :  { %v1818_v61 = vmul.f32 0.03125, %v1816_v60  ;;  %v2805_v60 = vld [vmem:[%s3953_s8] ss:$0 sm:$0xff] }
 0x1f7   :  { %v1819_v62 = vsub.f32 %v1806_v58, %v1818_v61 }
 0x1f9   :  { %v1820_v63 = vmul.f32 %v1819_v62, %v1819_v62 }
 0x1fb   :  { %v1821_v0 = vsel %vm1813_vm2, %v1820_v63, 0.0 }
 0x1fc   :  { %1822 = vadd.xlane.f32.xlu0 %v1821_v0 }
 0x289   :  { %v1823_v9 = vpop.xlane.xlu0 %1822 }
 0x28a   :  { %v1824_v41 = vmul.f32 0.03125, %v1823_v9  ;;  %v1963_v9 = vld [vmem:[%s3955_s10 + $0x20] sm:$0xff] }
 0x28c   :  { %v1825_v10 = vadd.f32 1e-05, %v1824_v41  ;;  %v1971_v41 = vld [vmem:[%s3955_s10 + $0x60] sm:$0xff] }
 0x28e   :  { %3182 = vrsqrt.f32 %v1825_v10  ;;  %v1964_v10 = vld [vmem:[%s3955_s10 + $0x28] sm:$0xff] }
 0x298   :  { %v3183_v11 = vpop.eup %3182 }
 0x299   :  { %v1827_v13 = vmul.f32 %v3183_v11, %v1819_v62  ;;  %v2806_v62 = vld [vmem:[%s3954_s9] ss:$0 sm:$0xff]  ;;  %v1972_v11 = vld [vmem:[%s3955_s10 + $0x68] sm:$0xff] }
 0x29b   :  { %v1834_v15 = vmul.f32 %v2801_v12, %v1827_v13  ;;  %v2827_v12 = vcombine.low %v1977_v1, %v1985_v2  ;;  %v2829_v13 = vcombine.low %v1978_v3, %v1986_v4 }
 0x29d   :  { %v1841_v16 = vadd.f32 %v2802_v14, %v1834_v15  ;;  %v2816_v14 = vcombine.high %v1963_v9, %v1971_v41  ;;  %v2818_v15 = vcombine.high %v1964_v10, %v1972_v11 }
 0x29f   :  { %v1842_v17 = vmax.f32 %v1841_v16, 0.0  ;;  %v1979_v16 = vld [vmem:[%s3955_s10 + $0xa0] sm:$0xff] }
 0x2a1   :  { %3037 = vmatmul.mubr.msk.f32.vlgmr.msra.gmra.mrb[16].mxu0 %vm1854_vm4, %v1842_v17  ;;  %v1987_v17 = vld [vmem:[%s3955_s10 + $0xe0] sm:$0xff] }
 0x2a2   :  { %2311 = vmatprep.mubr.bf16.mxu0 %v3211_v21  ;;  %2280 = vmatpush1.bf16.msra.mxu0 %v2809_v35  ;;  %v2831_v29 = vcombine.low %v1979_v16, %v1987_v17  ;;  %v1982_v35 = vld [vmem:[%s3955_s10 + $0xb8] sm:$0xff] }
 0x2a3   :  { %2281 = vmatprep.subr.bf16.mxu0 %v2826_v46  ;;  %v2838_v42 = vcombine.high %v1982_v35, %v1990_v37  ;;  %v2837_v44 = vcombine.low %v1982_v35, %v1990_v37 }
 0x2a6   :  { %2282 = vmatpush1.bf16.msra.mxu0 %v2825_v45  ;;  %v3215_v45 = vmov 1983009808  }
 0x2a7   :  { %2361 = vmatprep.subr.bf16.mxu0 %v2814_v55  ;;  %v2585_v46 = vunpack.c.l.s4 %v3215_v45 }
 0x374   :  { %v1924_v19 = vpop.f32.mrb[16].mxu0 }
 0x375   :  { %v1925_v20 = vadd.f32 %v2803_v18, %v1924_v19  ;;  %v3038_v22 = vpop.f32.mrb[17].mxu0  ;;  %v1980_v18 = vld [vmem:[%s3955_s10 + $0xa8] sm:$0xff] }
 0x376   :  { %v1988_v19 = vld [vmem:[%s3955_s10 + $0xe8] sm:$0xff]  ;;  %v2817_v22 = vcombine.low %v1964_v10, %v1972_v11 }
 0x377   :  { %v1930_v23 = vsel %vm1813_vm2, %v1925_v20, 0.0  ;;  %v2833_v30 = vcombine.low %v1980_v18, %v1988_v19 }
 0x378   :  { %1931 = vadd.xlane.f32.xlu1 %v1930_v23  ;;  %v2832_v23 = vcombine.high %v1979_v16, %v1987_v17 }
 0x405   :  { %v1932_v24 = vpop.xlane.xlu1 %1931 }
 0x406   :  { %v1933_v25 = vmul.f32 0.03125, %v1932_v24  ;;  %v2834_v24 = vcombine.high %v1980_v18, %v1988_v19 }
 0x408   :  { %v1934_v26 = vsub.f32 %v1925_v20, %v1933_v25  ;;  %v2815_v20 = vcombine.low %v1963_v9, %v1971_v41  ;;  %v1965_v25 = vld [vmem:[%s3955_s10 + $0x30] sm:$0xff] }
 0x40a   :  { %v1935_v27 = vmul.f32 %v1934_v26, %v1934_v26 }
 0x40c   :  { %v1936_v28 = vsel %vm1813_vm2, %v1935_v27, 0.0  ;;  %v1966_v27 = vld [vmem:[%s3955_s10 + $0x38] sm:$0xff] }
 0x40d   :  { %1937 = vadd.xlane.f32.xlu1 %v1936_v28  ;;  %v1974_v28 = vld [vmem:[%s3955_s10 + $0x78] sm:$0xff] }
 0x40e   :  { %v2822_v32 = vcombine.high %v1966_v27, %v1974_v28  ;;  %v2821_v39 = vcombine.low %v1966_v27, %v1974_v28  ;;  %v1992_v27 = vld [vmem:[%s3956_s11 + $0x8] sm:$0xff]  ;;  %s3216_s11 = smov [#allocation2]  }
 0x40f   :  { %v2038_v33 = vrot.slane %v1992_v27, %v2005_v47  ;;  %v2034_v37 = vrot.slane %v1992_v27, %v2001_v50  ;;  %s2664_s0 = sshll.u32 %s3216_s11, 4  ;;  %s2665_s0 = int_to_ptr.vmem [resolvable:$true] %s2664_s0 }
 0x410   :  { %s3186_s25 = scalar_lea.vmem %s2665_s0, 512  ;;  %p3191_p1 = scmp.lt.s32.totalorder %s2665_s0, %s2665_s0 }
 0x411   :  { %p3187_p0 = scmp.ne.s32.totalorder %s2665_s0, %s3186_s25  ;;  %p3192_p2 = scmp.lt.s32.totalorder %s3186_s25, %s3186_s25 }
 0x413   :  { %p3193_p3 = por %p3192_p2, %p3191_p1 }
 0x415   :  { %p3194_p4 = pnand %p3193_p3, %p3187_p0 }
 0x49a   :  { %v1938_v56 = vpop.xlane.xlu1 %1937 }
 0x49b   :  { %v1939_v57 = vmul.f32 0.03125, %v1938_v56 }
 0x49d   :  { %v1940_v58 = vadd.f32 1e-05, %v1939_v57 }
 0x49f   :  { %3184 = vrsqrt.f32 %v1940_v58 }
 0x4a9   :  { %v3185_v59 = vpop.eup %3184 }
 0x4aa   :  { %v1942_v61 = vmul.f32 %v3185_v59, %v1934_v26  ;;  %v1973_v26 = vld [vmem:[%s3955_s10 + $0x70] sm:$0xff] }
 0x4ab   :  { %v2820_v31 = vcombine.high %v1965_v25, %v1973_v26  ;;  %v2819_v38 = vcombine.low %v1965_v25, %v1973_v26 }
 0x4ac   :  { %v1949_v63 = vmul.f32 %v2805_v60, %v1942_v61 }
 0x4ae   :  { %v1956_v0 = vadd.f32 %v2806_v62, %v1949_v63  ;;  %v2013_v63 = vsub.s32 4, %v3381_v36 }
 0x4b0   :  { %v1957_v5 = vmax.f32 %v1956_v0, 0.0  ;;  %v2021_v0 = vsub.s32 6, %v3381_v36  ;;  %v2014_v10 = vrot.slane %v1991_v49, %v2013_v63 }
 0x4b2   :  { %v3835_v6 = vpack.c.bf16 %v1957_v5, %v1957_v5  ;;  %v2017_v5 = vsub.s32 5, %v3381_v36  ;;  %v2022_v11 = vrot.slane %v1991_v49, %v2021_v0 }
 0x4b4   :  { %2839 = vmatmul.mubr.msk.bf16.vlgmr.msra.gmra.mrb[16].mxu1 %vm1854_vm4, %v3835_v6  ;;  %2840 = vmatmul.mubr.msk.bf16.vlgmr.msra.gmra.mrb[20].mxu0 %vm1854_vm4, %v3835_v6 }
 0x4b5   :  { %2321 = vmatpush1.bf16.msra.mxu1 %v2811_v51  ;;  %2362 = vmatpush1.bf16.msra.mxu0 %v2813_v54  ;;  %v2586_v51 = vunpack.c.0.s8 %v2585_v46  ;;  %v2002_v54 = vrot.slane %v1991_v49, %v2001_v50 }
 0x4b6   :  { %2322 = vmatprep.subr.bf16.mxu1 %v2828_v7  ;;  %2363 = vmatprep.subr.bf16.mxu0 %v2830_v8 }
 0x4b7   :  { %2352 = vmatprep.mubr.bf16.mxu1 %v3211_v21  ;;  %2393 = vmatprep.mubr.bf16.mxu0 %v3211_v21  ;;  %v3915_v58 = vsub.s32 %v2586_v51, %v3381_v36 }
 0x4b9   :  { %2323 = vmatpush1.bf16.msra.mxu1 %v2827_v12  ;;  %2364 = vmatpush1.bf16.msra.mxu0 %v2829_v13 }
 0x4ba   :  { %2402 = vmatprep.subr.bf16.mxu1 %v2816_v14  ;;  %2443 = vmatprep.subr.bf16.mxu0 %v2818_v15  ;;  %v2018_v14 = vrot.slane %v1991_v49, %v2017_v5 }
 0x4bc   :  { %2841 = vmatmul.mubr.msk.bf16.vlgmr.msra.gmra.mrb[20].mxu1 %vm1854_vm4, %v3835_v6  ;;  %2842 = vmatmul.mubr.msk.bf16.vlgmr.msra.gmra.mrb[24].mxu0 %vm1854_vm4, %v3835_v6 }
 0x4bd   :  { %2403 = vmatpush1.bf16.msra.mxu1 %v2815_v20  ;;  %2444 = vmatpush1.bf16.msra.mxu0 %v2817_v22 }
 0x4be   :  { %2404 = vmatprep.subr.bf16.mxu1 %v2832_v23  ;;  %2445 = vmatprep.subr.bf16.mxu0 %v2834_v24 }
 0x4bf   :  { %2434 = vmatprep.mubr.bf16.mxu1 %v3211_v21  ;;  %2475 = vmatprep.mubr.bf16.mxu0 %v3211_v21 }
 0x4c1   :  { %2405 = vmatpush1.bf16.msra.mxu1 %v2831_v29  ;;  %2446 = vmatpush1.bf16.msra.mxu0 %v2833_v30 }
 0x4c2   :  { %2484 = vmatprep.subr.bf16.mxu1 %v2820_v31  ;;  %2525 = vmatprep.subr.bf16.mxu0 %v2822_v32  ;;  %v2030_v32 = vrot.slane %v1992_v27, %v3397_v48 }
 0x4c4   :  { %2843 = vmatmul.mubr.msk.bf16.vlgmr.msra.gmra.mrb[24].mxu1 %vm1854_vm4, %v3835_v6  ;;  %2844 = vmatmul.mubr.msk.bf16.vlgmr.msra.gmra.mrb[28].mxu0 %vm1854_vm4, %v3835_v6 }
 0x4c5   :  { %2485 = vmatpush1.bf16.msra.mxu1 %v2819_v38  ;;  %2526 = vmatpush1.bf16.msra.mxu0 %v2821_v39 }
 0x4c6   :  { %2486 = vmatprep.subr.bf16.mxu1 %v2836_v40  ;;  %2527 = vmatprep.subr.bf16.mxu0 %v2838_v42 }
 0x4c7   :  { %2516 = vmatprep.mubr.bf16.mxu1 %v3211_v21  ;;  %2557 = vmatprep.mubr.bf16.mxu0 %v3211_v21  ;;  %v2009_v21 = vsub.s32 3, %v3381_v36 }
 0x4c9   :  { %2487 = vmatpush1.bf16.msra.mxu1 %v2835_v43  ;;  %2528 = vmatpush1.bf16.msra.mxu0 %v2837_v44  ;;  %v2010_v55 = vrot.slane %v1991_v49, %v2009_v21  ;;  %v2042_v38 = vrot.slane %v1992_v27, %v2009_v21 }
 0x4cc   :  { %2845 = vmatmul.mubr.msk.bf16.vlgmr.msra.gmra.mrb[28].mxu1 %vm1854_vm4, %v3835_v6  ;;  %2846 = vmatmul.mubr.msk.bf16.vlgmr.msra.gmra.mrb[32].mxu0 %vm1854_vm4, %v3835_v6  ;;  %v2025_v6 = vsub.s32 7, %v3381_v36 }
 0x4ce   :  { %v2026_v15 = vrot.slane %v1991_v49, %v2025_v6 }
 0x587   :  { %v2272_v56 = vpop.f32.mrb[16].mxu1  ;;  %v2313_v57 = vpop.f32.mrb[20].mxu0 }
 0x588   :  { %v2273_v59 = vadd.f32 %v2272_v56, %v1998_v52  ;;  %v2314_v60 = vadd.f32 %v2313_v57, %v2006_v53  ;;  %v2274_v61 = vpop.f32.mrb[17].mxu1  ;;  %v2315_v62 = vpop.f32.mrb[21].mxu0  ;;  %v2046_v56 = vrot.slane %v1992_v27, %v2013_v63  ;;  %v2054_v57 = vrot.slane %v1992_v27, %v2021_v0 }
 0x589   :  { %v2275_v1 = vadd.f32 %v2274_v61, %v2002_v54  ;;  %v2316_v2 = vadd.f32 %v2315_v62, %v2010_v55  ;;  %v2276_v3 = vpop.f32.mrb[18].mxu1  ;;  %v2317_v4 = vpop.f32.mrb[22].mxu0 }
 0x58a   :  { %v2277_v7 = vpop.f32.mrb[19].mxu1  ;;  %v2318_v8 = vpop.f32.mrb[23].mxu0 }
 0x58b   :  { %v2582_v9 = vcombine.low %v2273_v59, %v2275_v1  ;;  %v2583_v41 = vcombine.low %v2314_v60, %v2316_v2  ;;  %v2050_v59 = vrot.slane %v1992_v27, %v2017_v5  ;;  %v2058_v60 = vrot.slane %v1992_v27, %v2025_v6 }
 0x58d   :  { %v2590_v12 = vrot.slane %v2582_v9, %v3915_v58  ;;  %v2597_v13 = vrot.slane %v2583_v41, %v3915_v58 }
 0x58f   :  { %v2598_v16 = vcombine.low %v2590_v12, %v2597_v13  ;;  %v2354_v17 = vpop.f32.mrb[20].mxu1  ;;  %v2395_v18 = vpop.f32.mrb[24].mxu0 }
 0x590   :  { %v2355_v19 = vadd.f32 %v2354_v17, %v2014_v10  ;;  %v2396_v20 = vadd.f32 %v2395_v18, %v2022_v11  ;;  %v2356_v22 = vpop.f32.mrb[21].mxu1  ;;  %v2397_v23 = vpop.f32.mrb[25].mxu0 }
 0x591   :  { %2654 = vst [vmem:[#allocation2] sm:$0xff] %v2598_v16  ;;  %v2357_v36 = vadd.f32 %v2356_v22, %v2018_v14  ;;  %v2398_v24 = vadd.f32 %v2397_v23, %v2026_v15  ;;  %v2358_v25 = vpop.f32.mrb[22].mxu1  ;;  %v2399_v26 = vpop.f32.mrb[26].mxu0 }
 0x592   :  { %v2359_v28 = vpop.f32.mrb[23].mxu1  ;;  %v2400_v29 = vpop.f32.mrb[27].mxu0 }
 0x593   :  { %v2599_v30 = vcombine.low %v2355_v19, %v2357_v36  ;;  %v2600_v31 = vcombine.low %v2396_v20, %v2398_v24 }
 0x595   :  { %v2607_v34 = vrot.slane %v2599_v30, %v3915_v58  ;;  %v2614_v35 = vrot.slane %v2600_v31, %v3915_v58 }
 0x597   :  { %v2615_v39 = vcombine.low %v2607_v34, %v2614_v35  ;;  %v2436_v40 = vpop.f32.mrb[24].mxu1  ;;  %v2477_v42 = vpop.f32.mrb[28].mxu0 }
 0x598   :  { %v2437_v43 = vadd.f32 %v2436_v40, %v2030_v32  ;;  %v2478_v44 = vadd.f32 %v2477_v42, %v2038_v33  ;;  %v2438_v45 = vpop.f32.mrb[25].mxu1  ;;  %v2479_v46 = vpop.f32.mrb[29].mxu0 }
 0x599   :  { %2655 = vst [vmem:[#allocation2 + $0x8] sm:$0xff] %v2615_v39  ;;  %v2439_v49 = vadd.f32 %v2438_v45, %v2034_v37  ;;  %v2480_v51 = vadd.f32 %v2479_v46, %v2042_v38  ;;  %v2440_v52 = vpop.f32.mrb[26].mxu1  ;;  %v2481_v53 = vpop.f32.mrb[30].mxu0 }
 0x59a   :  { %v2441_v48 = vpop.f32.mrb[27].mxu1  ;;  %v2482_v47 = vpop.f32.mrb[31].mxu0 }
 0x59b   :  { %v2616_v54 = vcombine.low %v2437_v43, %v2439_v49  ;;  %v2617_v55 = vcombine.low %v2478_v44, %v2480_v51 }
 0x59d   :  { %v2624_v50 = vrot.slane %v2616_v54, %v3915_v58  ;;  %v2631_v21 = vrot.slane %v2617_v55, %v3915_v58 }
 0x59f   :  { %v2632_v61 = vcombine.low %v2624_v50, %v2631_v21  ;;  %v2518_v62 = vpop.f32.mrb[28].mxu1  ;;  %v2559_v1 = vpop.f32.mrb[32].mxu0 }
 0x5a0   :  { %v2519_v2 = vadd.f32 %v2518_v62, %v2046_v56  ;;  %v2560_v3 = vadd.f32 %v2559_v1, %v2054_v57  ;;  %v2520_v4 = vpop.f32.mrb[29].mxu1  ;;  %v2561_v7 = vpop.f32.mrb[33].mxu0 }
 0x5a1   :  { %2656 = vst [vmem:[#allocation2 + $0x10] sm:$0xff] %v2632_v61  ;;  %v2521_v8 = vadd.f32 %v2520_v4, %v2050_v59  ;;  %v2562_v9 = vadd.f32 %v2561_v7, %v2058_v60  ;;  %v2522_v41 = vpop.f32.mrb[30].mxu1  ;;  %v2563_v10 = vpop.f32.mrb[34].mxu0 }
 0x5a2   :  { %v2523_v63 = vpop.f32.mrb[31].mxu1  ;;  %v2564_v0 = vpop.f32.mrb[35].mxu0 }
 0x5a3   :  { %v2633_v11 = vcombine.low %v2519_v2, %v2521_v8  ;;  %v2634_v12 = vcombine.low %v2560_v3, %v2562_v9 }
 0x5a5   :  { %v2641_v5 = vrot.slane %v2633_v11, %v3915_v58  ;;  %v2648_v6 = vrot.slane %v2634_v12, %v3915_v58 }
 0x5a7   :  { %v2649_v13 = vcombine.low %v2641_v5, %v2648_v6 }
 0x5a9   :  { %2657 = vst [vmem:[#allocation2 + $0x18] sm:$0xff] %v2649_v13 }
 0x5aa   :  { %3197 = shalt.err (!%p3194_p4)
}
 0x5ab   :  { %s3198_s28 = scalar_lea.hbm %s3957_s12, 512 }
 0x5ac   :  { %p3199_p5 = scmp.ne.s32.totalorder %s3957_s12, %s3198_s28  ;;  %p3202_p6 = scmp.lt.u32.totalorder %s3198_s28, %s3957_s12 }
 0x5ae   :  { %p3204_p7 = pnand %p3202_p6, %p3199_p5 }
 0x5b0   :  { %3207 = shalt.err (!%p3204_p7)
}
 0x5b1   :  { %2667 = dma.vmem_to_hbm [thread:$0]  %s2665_s0, 512, %s3957_s12, [#allocation3]  }
 0x5b2   :  { %3208 = dma.done.wait [#allocation3], 512  }
 0x5b3   :  { %3209 = vsyncadd [#allocation3], 4294966784 }
 0x5b4   :  { %2671 = vsyncpa [#allocation3], 1 }

</bundles_post_ra>
